<compile_context>
chip_gen: v6e
topology: v6e:2x2x1
jax: 0.10.0
libtpu: 0.0.40
codegen_flags: <defaults>
</compile_context>

<pallas_src>
import functools

import jax
import jax.numpy as jnp
from jax.experimental import pallas as pl
from jax.experimental.pallas import tpu as pltpu


def _round_up(x, m):
    return (x + m - 1) // m * m


def _tpu_vmem_capacity_bytes():
    """Best-effort per-core VMEM capacity; conservative fallback is v7x (64 MiB)."""
    try:
        info = pltpu.get_tpu_info()
        for attr in ("vmem_capacity_bytes", "vmem_bytes", "vmem_size_bytes"):
            v = getattr(info, attr, None)
            if v:
                return int(v)
    except Exception:
        pass
    return 64 << 20


def _lm_head_kernel(x_ref, w_ref, o_ref):
    # Full-K tile: one MXU pass with f32 accumulation, no scratch accumulator.
    o_ref[...] = jnp.dot(
        x_ref[...], w_ref[...], preferred_element_type=jnp.float32
    ).astype(o_ref.dtype)


def lm_head_matmul(x, w_t, *, tn, out_dtype, vmem_budget_bytes,
                   tm_target=512, max_resident_x_bytes=None):
    """x: [M, K] tokens-by-hidden (compute dtype), w_t: [K, N] -> logits [M_pad, N]."""
    M, K = x.shape
    K2, N = w_t.shape
    assert K == K2 and N % tn == 0

    in_size = x.dtype.itemsize
    w_size = w_t.dtype.itemsize
    out_size = jnp.dtype(out_dtype).itemsize
    w_tile_bytes = 2 * K * tn * w_size  # double-buffered weight tile

    # ---- Path 1: whole activation block resident, 1-D vocab-only grid. ----
    fp_1d = 2 * M * K * in_size + w_tile_bytes + 2 * M * tn * out_size
    use_1d = fp_1d <= vmem_budget_bytes
    if max_resident_x_bytes is not None:
        use_1d = use_1d and (M * K * in_size <= max_resident_x_bytes)

    if use_1d:
        m_pad = M
        grid = (N // tn,)
        in_specs = [
            pl.BlockSpec((M, K), lambda j: (0, 0)),    # x resident, DMA'd once
            pl.BlockSpec((K, tn), lambda j: (0, j)),   # weight tile, full K
        ]
        out_specs = pl.BlockSpec((M, tn), lambda j: (0, j))
        dim_sem = ("parallel",)
        footprint = fp_1d
    else:
        # ---- Path 2: large prefill, 2-D grid (vocab outer, tokens inner). ----
        # Balanced tm (multiple of 16 for bf16 sublane packing), capped by the
        # VMEM budget so double-buffering never degrades.
        n_tiles = pl.cdiv(M, tm_target)
        tm = _round_up(pl.cdiv(M, n_tiles), 16)
        tm_fit = (vmem_budget_bytes - w_tile_bytes) // (2 * K * in_size + 2 * tn * out_size)
        tm_fit = max(16, (tm_fit // 16) * 16)
        tm = max(16, min(tm, tm_fit))
        m_pad = _round_up(M, tm)
        if m_pad != M:
            x = jnp.pad(x, ((0, m_pad - M), (0, 0)))
        grid = (N // tn, m_pad // tm)
        in_specs = [
            pl.BlockSpec((tm, K), lambda j, i: (i, 0)),   # token tile, full K
            pl.BlockSpec((K, tn), lambda j, i: (0, j)),   # weight tile (resident over i)
        ]
        out_specs = pl.BlockSpec((tm, tn), lambda j, i: (i, j))
        # Only the outer (vocab) axis is megacore-shardable: on v7x this splits
        # the weight read across the 2 TensorCores; sharding the token axis
        # would make each core stream the full weight.
        dim_sem = ("parallel", "arbitrary")
        footprint = 2 * tm * K * in_size + w_tile_bytes + 2 * tm * tn * out_size

    # 32 MiB floor (v5e scoped default is 16 MiB), sized from the real tiles.
    vmem_limit = max(32 << 20, int(footprint) + (4 << 20))

    cost = pl.CostEstimate(
        flops=2 * m_pad * K * N,
        transcendentals=0,
        bytes_accessed=m_pad * K * in_size + K * N * w_size + m_pad * N * out_size,
    )

    return pl.pallas_call(
        _lm_head_kernel,
        out_shape=jax.ShapeDtypeStruct((m_pad, N), out_dtype),
        grid_spec=pltpu.PrefetchScalarGridSpec(
            num_scalar_prefetch=0,
            grid=grid,
            in_specs=in_specs,
            out_specs=out_specs,
        ),
        compiler_params=pltpu.CompilerParams(
            dimension_semantics=dim_sem,
            vmem_limit_bytes=vmem_limit,
        ),
        cost_estimate=cost,
    )(x, w_t)


class GPT2OutputPhasePallas:
    """JAX/Pallas equivalent of GPT2_Output_Phase: logits = hidden @ W^T (no bias)."""

    def __init__(self, n_embd, vocab_size, key, *,
                 compute_dtype=jnp.bfloat16, out_dtype=None,
                 tn_target=2048, tm_target=512, max_resident_x_bytes=None):
        self.n_embd = n_embd
        self.vocab_size = vocab_size
        self.compute_dtype = compute_dtype
        self.out_dtype = out_dtype              # None -> follow hidden_states dtype
        self.tm_target = tm_target
        self.max_resident_x_bytes = max_resident_x_bytes

        # Generation-aware VMEM budget (~3/4 of physical per-core VMEM).
        self.vmem_budget = (3 * _tpu_vmem_capacity_bytes()) // 4

        # PyTorch-convention weight [V, H] (kept in f32 for reference checks only).
        self.weight = (
            jax.random.normal(key, (vocab_size, n_embd), dtype=jnp.float32) * 0.02
        )

        # Kernel-side weight: pre-transposed to [H, V], vocab padded to the
        # (wide, lane-dense) tile width chosen here, cast once to compute dtype.
        # tn is a multiple of 256 (v6e/v7x MXU) and hence of 128 (v5e).
        tn_target = max(256, _round_up(tn_target, 256))
        self.tn = min(tn_target, _round_up(vocab_size, 256))
        self.v_padded = _round_up(vocab_size, self.tn)
        w_hv = self.weight.T.astype(compute_dtype)
        if self.v_padded != vocab_size:
            w_hv = jnp.pad(w_hv, ((0, 0), (0, self.v_padded - vocab_size)))
        self.w_hv = w_hv

    @functools.partial(jax.jit, static_argnums=0)
    def __call__(self, hidden_states):
        B, S, H = hidden_states.shape
        assert H == self.n_embd
        out_dtype = self.out_dtype if self.out_dtype is not None else hidden_states.dtype

        M = B * S
        x = hidden_states.reshape(M, H).astype(self.compute_dtype)

        logits = lm_head_matmul(
            x, self.w_hv,
            tn=self.tn,
            out_dtype=out_dtype,
            vmem_budget_bytes=self.vmem_budget,
            tm_target=self.tm_target,
            max_resident_x_bytes=self.max_resident_x_bytes,
        )
        return logits[:M, : self.vocab_size].reshape(B, S, self.vocab_size)


def _reference(hidden_states, weight):
    # Pure-JAX (f32) reference: hidden_states @ weight.T
    return jnp.einsum("bsh,vh->bsv", hidden_states, weight)


if __name__ == "__main__":
    key = jax.random.PRNGKey(0)
    k_w, k_x, k_w2, k_x2, k_w3, k_x3 = jax.random.split(key, 6)

    # Case 1: nicely aligned toy shapes (1-D resident-X path).
    batch, seq, n_embd, vocab_size = 2, 8, 32, 256
    model = GPT2OutputPhasePallas(n_embd, vocab_size, k_w)
    hidden = jax.random.normal(k_x, (batch, seq, n_embd), dtype=jnp.float32)
    logits = jax.block_until_ready(model(hidden))
    ref = _reference(hidden, model.weight)
    assert logits.shape == (batch, seq, vocab_size)
    assert jnp.allclose(logits, ref, atol=2e-2, rtol=2e-2), float(
        jnp.max(jnp.abs(logits - ref))
    )

    # Case 2: ragged shapes (tokens not a multiple of 8, vocab not a multiple
    # of 128) to exercise the vocab-padding path on the 1-D grid.
    batch2, seq2, n_embd2, vocab2 = 3, 5, 48, 250
    model2 = GPT2OutputPhasePallas(n_embd2, vocab2, k_w2)
    hidden2 = jax.random.normal(k_x2, (batch2, seq2, n_embd2), dtype=jnp.float32)
    logits2 = jax.block_until_ready(model2(hidden2))
    ref2 = _reference(hidden2, model2.weight)
    assert logits2.shape == (batch2, seq2, vocab2)
    assert jnp.allclose(logits2, ref2, atol=2e-2, rtol=2e-2), float(
        jnp.max(jnp.abs(logits2 - ref2))
    )

    # Case 3: force the 2-D (vocab-outer, token-inner) prefill path, with a
    # ragged token count (exercises balanced-tm padding) and multiple vocab
    # tiles (tn_target=256, vocab padded to 768 -> 3 vocab grid steps).
    batch3, seq3, n_embd3, vocab3 = 2, 23, 64, 600
    model3 = GPT2OutputPhasePallas(
        n_embd3, vocab3, k_w3, tn_target=256, max_resident_x_bytes=0
    )
    hidden3 = jax.random.normal(k_x3, (batch3, seq3, n_embd3), dtype=jnp.float32)
    logits3 = jax.block_until_ready(model3(hidden3))
    ref3 = _reference(hidden3, model3.weight)
    assert logits3.shape == (batch3, seq3, vocab3)
    assert jnp.allclose(logits3, ref3, atol=2e-2, rtol=2e-2), float(
        jnp.max(jnp.abs(logits3 - ref3))
    )

    print("KERNEL_OK")
</pallas_src>

<mosaic_0001>
module attributes {stable_mosaic.version = 11 : i64} {
  func.func @_lm_head_kernel(%arg0: i32, %arg1: memref<16x32xbf16, #tpu.memory_space<vmem>>, %arg2: memref<32x256xbf16, #tpu.memory_space<vmem>>, %arg3: memref<16x256xf32, #tpu.memory_space<vmem>>) attributes {dimension_semantics = [#tpu.dimension_semantics<parallel>], iteration_bounds = array<i64: 1>, scalar_prefetch = 0 : i64, scratch_operands = 0 : i64, tpu.core_type = #tpu.core_type<tc>, window_params = [{pipeline_mode = #tpu.pipeline_mode<synchronous>, transform_indices = @transform_0, window_bounds = array<i64: 16, 32>}, {transform_indices = @transform_1, window_bounds = array<i64: 32, 256>}, {transform_indices = @transform_2, window_bounds = array<i64: 16, 256>}]} {
    %c0 = arith.constant 0 : index
    %c0_0 = arith.constant 0 : index
    %0 = vector.load %arg1[%c0, %c0_0] : memref<16x32xbf16, #tpu.memory_space<vmem>>, vector<16x32xbf16>
    %c0_1 = arith.constant 0 : index
    %c0_2 = arith.constant 0 : index
    %1 = vector.load %arg2[%c0_1, %c0_2] : memref<32x256xbf16, #tpu.memory_space<vmem>>, vector<32x256xbf16>
    %cst = arith.constant dense<0.000000e+00> : vector<16x256xf32>
    %2 = tpu.matmul %0, %1, %cst {dimension_numbers = #tpu.dot_dimension_numbers<[1], [0], [0], [1], [0, 0, 1, 1], [], []>} : vector<16x32xbf16>, vector<32x256xbf16>, vector<16x256xf32> -> vector<16x256xf32>
    %c0_3 = arith.constant 0 : index
    %c0_4 = arith.constant 0 : index
    %3 = vector.load %arg3[%c0_3, %c0_4] : memref<16x256xf32, #tpu.memory_space<vmem>>, vector<16x256xf32>
    tpu.vector_store %arg3[%c0_3, %c0_4], %2 {strides = array<i32>} : memref<16x256xf32, #tpu.memory_space<vmem>>, vector<16x256xf32>,
    return
  }
  func.func @transform_0(%arg0: i32) -> (i32, i32) {
    %c0_i32 = arith.constant 0 : i32
    %c0_i32_0 = arith.constant 0 : i32
    %c0_i32_1 = arith.constant 0 : i32
    return %c0_i32, %c0_i32_0 : i32, i32
  }
  func.func @transform_1(%arg0: i32) -> (i32, i32) {
    %c0_i32 = arith.constant 0 : i32
    %c0_i32_0 = arith.constant 0 : i32
    return %c0_i32, %arg0 : i32, i32
  }
  func.func @transform_2(%arg0: i32) -> (i32, i32) {
    %c0_i32 = arith.constant 0 : i32
    %c0_i32_0 = arith.constant 0 : i32
    return %c0_i32, %arg0 : i32, i32
  }
}

</mosaic_0001>

<bundles_post_ra>
// kernel: a_call__.1
= control target key start
LH: loop header
LB: loop body
LE: loop exit
PB: predicated region body
PF: predicated region fallthrough
CT: control target
= control target key end

     0   :  { %7 = vsyncpa [#allocation3], 0  ;;  %s221_s0 = inlined_call_operand.vmem [shape: bf16[16,32], index: 0, kind: input, shape index: {}]   ;;  %s222_s1 = inlined_call_operand.hbm [shape: bf16[32,256], index: 1, kind: input, shape index: {}]   ;;  %s223_s2 = inlined_call_operand.hbm [shape: f32[16,256], index: 2, kind: output, shape index: {}]  }
   0x1   :  { %8 = vsyncpa [#allocation4], 0  ;;  %s190_s9 = smov [#allocation2]  }
   0x2   :  { %s16_s10 = sshll.u32 %s190_s9, 4  ;;  %s17_s10 = int_to_ptr.vmem [resolvable:$true] %s16_s10 }
   0x3   :  { %s154_s11 = scalar_lea.vmem %s17_s10, 512  ;;  %p159_p1 = scmp.lt.s32.totalorder %s17_s10, %s17_s10 }
   0x4   :  { %p155_p0 = scmp.ne.s32.totalorder %s17_s10, %s154_s11  ;;  %p160_p2 = scmp.lt.s32.totalorder %s154_s11, %s154_s11 }
   0x6   :  { %p161_p3 = por %p160_p2, %p159_p1 }
   0x8   :  { %p162_p4 = pnand %p161_p3, %p155_p0 }
   0xa   :  { %165 = shalt.err (!%p162_p4)
}
   0xb   :  { %s191_s12 = smov 128   ;;  %s192_s13 = smov 8  }
   0xc   :  { %22 = dma.hbm_to_vmem [thread:$0]  %s222_s1, 512, %s17_s10, [#allocation3], %s191_s12, %s191_s12, %s192_s13  }
   0xd   :  { %186 = dma.done.wait [#allocation3], 512  }
   0xe   :  { %187 = vsyncadd [#allocation3], 4294966784  ;;  %v193_v0 = vmov 0   ;;  %v139_v1 = vld [vmem:[#allocation2 + $0x14] ss:$8 sps:$4 sm:$0xff]   ;;  %v145_v5 = vld [vmem:[%s221_s0] sm:$0xff]  }
   0xf   :  { %94 = vmatprep.mubr.bf16.mxu0 %v193_v0  ;;  %v141_v2 = vld [vmem:[#allocation2 + $0x10] ss:$8 sps:$4 sm:$0xff]   ;;  %74 = vmatprep.subr.bf16.mxu0 %v139_v1  ;;  %v142_v3 = vld [vmem:[#allocation2 + $0x4] ss:$8 sps:$4 sm:$0xff]   ;;  %v144_v4 = vld [vmem:[#allocation2] ss:$8 sps:$4 sm:$0xff]  }
  0x10   :  { %75 = vmatpush1.bf16.msra.mxu0 %v141_v2  ;;  %vm58_vm0 = vcmask 261120   ;;  %s194_s1 = smov [#allocation5]  }
  0x11   :  { %76 = vmatprep.subr.bf16.mxu0 %v142_v3  ;;  %s114_s18 = sshll.u32 %s194_s1, 4  ;;  %s115_s18 = int_to_ptr.vmem [resolvable:$true] %s114_s18 }
  0x12   :  { %s166_s19 = scalar_lea.vmem %s115_s18, 512  ;;  %p171_p6 = scmp.lt.s32.totalorder %s115_s18, %s115_s18 }
  0x13   :  { %p167_p5 = scmp.ne.s32.totalorder %s115_s18, %s166_s19  ;;  %p172_p7 = scmp.lt.s32.totalorder %s166_s19, %s166_s19 }
  0x14   :  { %77 = vmatpush1.bf16.msra.mxu0 %v144_v4 }
  0x15   :  { %p173_p8 = por %p172_p7, %p171_p6 }
  0x17   :  { %131 = vmatmul.mubr.msk.bf16.vlgmr.msra.gmra.mxu0 %vm58_vm0, %v145_v5  ;;  %p174_p9 = pnand %p173_p8, %p167_p5 }
  0xd7   :  { %v96_v6 = vpop.f32.mrf.mxu0 }
  0xd8   :  { %105 = vst [vmem:[#allocation5] sm:$0xff] %v96_v6 }
  0xd9   :  { %v98_v7 = vpop.f32.mrf.mxu0 }
  0xda   :  { %106 = vst [vmem:[#allocation5 + $0x8] sm:$0xff] %v98_v7 }
  0xdb   :  { %v100_v8 = vpop.f32.mrf.mxu0 }
  0xdc   :  { %107 = vst [vmem:[#allocation5 + $0x10] sm:$0xff] %v100_v8 }
  0xdd   :  { %v102_v9 = vpop.f32.mrf.mxu0 }
  0xde   :  { %108 = vst [vmem:[#allocation5 + $0x18] sm:$0xff] %v102_v9 }
  0xdf   :  { %177 = shalt.err (!%p174_p9)
}
  0xe0   :  { %s195_s0 = smov 256   ;;  %s196_s20 = smov 16  }
  0xe1   :  { %120 = dma.vmem_to_hbm [thread:$0]  %s115_s18, 512, %s223_s2, [#allocation4], %s195_s0, %s195_s0, %s196_s20  }
  0xe2   :  { %188 = dma.done.wait [#allocation4], 512  }
  0xe3   :  { %189 = vsyncadd [#allocation4], 4294966784 }
  0xe4   :  { %124 = vsyncpa [#allocation3], 1 }
  0xe5   :  { %125 = vsyncpa [#allocation4], 1 }

</bundles_post_ra>
